<compile_context>
chip_gen: v7x
topology: tpu7x:2x2x1
jax: 0.10.0
libtpu: 0.0.40
codegen_flags: <defaults>
</compile_context>

<pallas_src>
import functools

import jax
import jax.numpy as jnp
from jax.experimental import pallas as pl
from jax.experimental.pallas import tpu as pltpu

IGNORE_INDEX = 255


def _tpu_block_budget():
    """(target logits-block bytes, scoped VMEM limit bytes) per TPU generation."""
    kind = ""
    try:
        kind = jax.devices()[0].device_kind.lower()
    except Exception:
        pass
    if "v7" in kind:
        # 3.2 TB/s per TC but only 64 MiB physical VMEM: ~6 MiB blocks,
        # raised scoped limit to cover double-buffering + f32/exp temps.
        return 6 * 1024 * 1024, 48 * 1024 * 1024
    if "v6" in kind:
        # ~1.4 TB/s, 128 MiB VMEM: 4 MiB blocks ~90% of roofline.
        return 4 * 1024 * 1024, 40 * 1024 * 1024
    # v5e and unknown/older generations: 2 MiB blocks; explicit 32 MiB limit is
    # load-bearing on v5e (scoped default is only 16 MiB).
    return 2 * 1024 * 1024, 32 * 1024 * 1024


def _ce2d_kernel(x_ref, t_ref, sum_ref, cnt_ref, *, total_p, tile_p, exp_in_bf16):
    p_idx = pl.program_id(1)

    x = x_ref[0]                                   # (C, TILE_P), native dtype
    t = t_ref[0].astype(jnp.int32)                 # (1, TILE_P)

    # Pass 1 over x: per-pixel class max (across-vreg + small sublane reduce).
    m = jnp.max(x, axis=0, keepdims=True)          # (1, TILE_P)
    # Pass 2 over x: shifted logits; both the exp-sum and the target pick read
    # `shifted`, so the logits block itself is only traversed twice.
    shifted = x - m                                # (C, TILE_P), <= 0

    # exp in bf16 (packed EUP) when the input is bf16, else f32; accumulate f32.
    exp_in = shifted if exp_in_bf16 else shifted.astype(jnp.float32)
    s = jnp.sum(jnp.exp(exp_in), axis=0, keepdims=True,
                dtype=jnp.float32)                 # (1, TILE_P)

    # Target-class pick via one-hot select (no gather on TPU).
    c_iota = jax.lax.broadcasted_iota(jnp.int32, shifted.shape, 0)
    picked = jnp.sum(jnp.where(c_iota == t, shifted, 0),
                     axis=0, keepdims=True, dtype=jnp.float32)   # (1, TILE_P)

    # Mask ignore_index pixels and the ragged tail of the last pixel tile.
    lane = jax.lax.broadcasted_iota(jnp.int32, t.shape, 1)
    valid = (t != IGNORE_INDEX) & ((p_idx * tile_p + lane) < total_p)

    # loss = (m + log s) - x_t == log s - (x_t - m).  Keep the select form so
    # NaNs/Infs from unspecified padded data never reach the sum.
    loss = jnp.where(valid, jnp.log(s) - picked, 0.0)

    sum_ref[...] = jnp.sum(loss).reshape(1, 1, 1, 1)
    cnt_ref[...] = jnp.sum(valid.astype(jnp.float32)).reshape(1, 1, 1, 1)


@jax.jit
def cross_entropy_loss_2d(logits, target):
    """logits: (B, C, H, W) float; target: (B, H, W) int.  Scalar mean CE."""
    B, C, H, W = logits.shape
    P = H * W

    # Free, contiguous views: NCHW -> (B, C, P); NHW -> (B, 1, P).
    x = logits.reshape(B, C, P)
    if target.dtype.itemsize > 4:          # e.g. int64 masks under jax_enable_x64
        target = target.astype(jnp.int32)
    t = target.reshape(B, 1, P)            # native <=32-bit dtype, upcast in-kernel

    target_block_bytes, vmem_limit = _tpu_block_budget()
    bytes_per_pix = C * logits.dtype.itemsize
    tile_p = (target_block_bytes // max(1, bytes_per_pix)) // 128 * 128
    tile_p = max(128, tile_p)
    if tile_p >= P:
        tile_p = P                         # single tile: full dim, exempt from 128 rule
    n_p = pl.cdiv(P, tile_p)

    kernel = functools.partial(
        _ce2d_kernel, total_p=P, tile_p=tile_p,
        exp_in_bf16=(logits.dtype == jnp.bfloat16))

    n_pix = B * P
    cost = pl.CostEstimate(
        flops=5 * n_pix * C,
        transcendentals=n_pix * (C + 1),
        bytes_accessed=(logits.size * logits.dtype.itemsize
                        + t.size * t.dtype.itemsize + 8 * B * n_p),
    )

    sums, cnts = pl.pallas_call(
        kernel,
        out_shape=(
            jax.ShapeDtypeStruct((B, n_p, 1, 1), jnp.float32),
            jax.ShapeDtypeStruct((B, n_p, 1, 1), jnp.float32),
        ),
        grid=(B, n_p),
        in_specs=[
            # logits read in place: (1, C, TILE_P); TILE_P (mult. of 128) on lanes
            pl.BlockSpec((1, C, tile_p), lambda b, p: (b, 0, p)),
            # lane-dense targets, native integer dtype
            pl.BlockSpec((1, 1, tile_p), lambda b, p: (b, 0, p)),
        ],
        out_specs=(
            # per-(b, p) write-once partials -> no cross-step accumulation
            pl.BlockSpec((1, 1, 1, 1), lambda b, p: (b, p, 0, 0)),
            pl.BlockSpec((1, 1, 1, 1), lambda b, p: (b, p, 0, 0)),
        ),
        compiler_params=pltpu.CompilerParams(
            dimension_semantics=("parallel", "parallel"),
            vmem_limit_bytes=vmem_limit,
        ),
        cost_estimate=cost,
    )(x, t)

    # reduction='mean' over non-ignored pixels.  If every pixel is ignore_index
    # this is 0/0 = NaN, matching PyTorch's behaviour.
    return jnp.sum(sums) / jnp.sum(cnts)


def _reference_loss(logits, target):
    B, C, H, W = logits.shape
    x = jnp.transpose(logits, (0, 2, 3, 1)).reshape(-1, C).astype(jnp.float32)
    t = target.reshape(-1).astype(jnp.int32)
    lse = jax.scipy.special.logsumexp(x, axis=-1)
    picked = jnp.take_along_axis(x, jnp.clip(t, 0, C - 1)[:, None], axis=-1)[:, 0]
    valid = t != IGNORE_INDEX
    loss = jnp.where(valid, lse - picked, 0.0)
    return jnp.sum(loss) / jnp.sum(valid.astype(jnp.float32))


if __name__ == "__main__":
    key = jax.random.PRNGKey(0)
    k_logits, k_target, k_mask = jax.random.split(key, 3)

    B, C, H, W = 2, 4, 16, 16
    logits = jax.random.normal(k_logits, (B, C, H, W), dtype=jnp.float32)
    target = jax.random.randint(k_target, (B, H, W), 0, C, dtype=jnp.int32)
    # sprinkle some ignore_index pixels (~10%)
    ignore_mask = jax.random.uniform(k_mask, (B, H, W)) < 0.1
    target = jnp.where(ignore_mask, IGNORE_INDEX, target)

    loss = jax.block_until_ready(cross_entropy_loss_2d(logits, target))
    ref = jax.block_until_ready(_reference_loss(logits, target))
    assert jnp.allclose(loss, ref, rtol=1e-5, atol=1e-5), (loss, ref)

    print("KERNEL_OK")
</pallas_src>

<mosaic_0001>
module attributes {stable_mosaic.version = 11 : i64} {
  func.func @_ce2d_kernel(%arg0: i32, %arg1: i32, %arg2: memref<1x4x256xf32, #tpu.memory_space<vmem>>, %arg3: memref<1x1x256xi32, #tpu.memory_space<vmem>>, %arg4: memref<1x1x1x1xf32, #tpu.memory_space<vmem>>, %arg5: memref<1x1x1x1xf32, #tpu.memory_space<vmem>>) attributes {dimension_semantics = [#tpu.dimension_semantics<parallel>, #tpu.dimension_semantics<parallel>], iteration_bounds = array<i64: 2, 1>, scalar_prefetch = 0 : i64, scratch_operands = 0 : i64, tpu.core_type = #tpu.core_type<tc>, window_params = [{transform_indices = @transform_0, window_bounds = array<i64: 1, 4, 256>}, {transform_indices = @transform_1, window_bounds = array<i64: 1, 1, 256>}, {transform_indices = @transform_2, window_bounds = array<i64: 1, 1, 1, 1>}, {transform_indices = @transform_3, window_bounds = array<i64: 1, 1, 1, 1>}]} {
    %c0 = arith.constant 0 : index
    %c0_0 = arith.constant 0 : index
    %c0_1 = arith.constant 0 : index
    %0 = vector.load %arg2[%c0, %c0_0, %c0_1] : memref<1x4x256xf32, #tpu.memory_space<vmem>>, vector<1x4x256xf32>
    %1 = vector.shape_cast %0 : vector<1x4x256xf32> to vector<4x256xf32>
    %c0_2 = arith.constant 0 : index
    %c0_3 = arith.constant 0 : index
    %c0_4 = arith.constant 0 : index
    %2 = vector.load %arg3[%c0_2, %c0_3, %c0_4] : memref<1x1x256xi32, #tpu.memory_space<vmem>>, vector<1x1x256xi32>
    %3 = vector.shape_cast %2 : vector<1x1x256xi32> to vector<1x256xi32>
    %cst = arith.constant dense<0xFF800000> : vector<256xf32>
    %4 = vector.multi_reduction <maximumf>, %1, %cst [0] : vector<4x256xf32> to vector<256xf32>
    %5 = vector.shape_cast %4 : vector<256xf32> to vector<1x256xf32>
    %6 = vector.broadcast %5 : vector<1x256xf32> to vector<4x256xf32>
    %7 = arith.subf %1, %6 : vector<4x256xf32>
    %8 = math.exp %7 : vector<4x256xf32>
    %cst_5 = arith.constant dense<0.000000e+00> : vector<256xf32>
    %9 = vector.multi_reduction <add>, %8, %cst_5 [0] : vector<4x256xf32> to vector<256xf32>
    %10 = vector.shape_cast %9 : vector<256xf32> to vector<1x256xf32>
    %11 = tpu.iota {dimensions = array<i32: 0>} : vector<4x256xi32>
    %12 = vector.broadcast %3 : vector<1x256xi32> to vector<4x256xi32>
    %13 = arith.cmpi eq, %11, %12 : vector<4x256xi32>
    %c0_i32 = arith.constant 0 : i32
    %14 = arith.sitofp %c0_i32 : i32 to f32
    %15 = vector.broadcast %14 : f32 to vector<4x256xf32>
    %16 = arith.select %13, %7, %15 : vector<4x256xi1>, vector<4x256xf32>
    %cst_6 = arith.constant dense<0.000000e+00> : vector<256xf32>
    %17 = vector.multi_reduction <add>, %16, %cst_6 [0] : vector<4x256xf32> to vector<256xf32>
    %18 = vector.shape_cast %17 : vector<256xf32> to vector<1x256xf32>
    %19 = tpu.iota {dimensions = array<i32: 1>} : vector<1x256xi32>
    %c255_i32 = arith.constant 255 : i32
    %20 = vector.broadcast %c255_i32 : i32 to vector<1x256xi32>
    %21 = arith.cmpi ne, %3, %20 : vector<1x256xi32>
    %c256_i32 = arith.constant 256 : i32
    %22 = arith.muli %arg1, %c256_i32 : i32
    %23 = vector.broadcast %22 : i32 to vector<1x256xi32>
    %24 = arith.addi %23, %19 : vector<1x256xi32>
    %c256_i32_7 = arith.constant 256 : i32
    %25 = vector.broadcast %c256_i32_7 : i32 to vector<1x256xi32>
    %26 = arith.cmpi slt, %24, %25 : vector<1x256xi32>
    %27 = arith.andi %21, %26 : vector<1x256xi1>
    %28 = math.log %10 : vector<1x256xf32>
    %29 = arith.subf %28, %18 : vector<1x256xf32>
    %cst_8 = arith.constant 0.000000e+00 : f32
    %30 = vector.broadcast %cst_8 : f32 to vector<1x256xf32>
    %31 = arith.select %27, %29, %30 : vector<1x256xi1>, vector<1x256xf32>
    %32 = vector.shape_cast %31 : vector<1x256xf32> to vector<1x1x256xf32>
    %cst_9 = arith.constant dense<0.000000e+00> : vector<1xf32>
    %33 = vector.multi_reduction <add>, %32, %cst_9 [1, 2] : vector<1x1x256xf32> to vector<1xf32>
    %34 = vector.shape_cast %33 : vector<1xf32> to vector<1x1x1xf32>
    %35 = vector.extract %34[0, 0, 0] : f32 from vector<1x1x1xf32>
    %36 = vector.broadcast %35 : f32 to vector<1x1x1x1xf32>
    %c0_10 = arith.constant 0 : index
    %c0_11 = arith.constant 0 : index
    %c0_12 = arith.constant 0 : index
    %c0_13 = arith.constant 0 : index
    %37 = vector.load %arg4[%c0_10, %c0_11, %c0_12, %c0_13] : memref<1x1x1x1xf32, #tpu.memory_space<vmem>>, vector<1x1x1x1xf32>
    tpu.vector_store %arg4[%c0_10, %c0_11, %c0_12, %c0_13], %36 {strides = array<i32>} : memref<1x1x1x1xf32, #tpu.memory_space<vmem>>, vector<1x1x1x1xf32>,
    %38 = arith.extui %27 : vector<1x256xi1> to vector<1x256xi32>
    %39 = arith.sitofp %38 : vector<1x256xi32> to vector<1x256xf32>
    %40 = vector.shape_cast %39 : vector<1x256xf32> to vector<1x1x256xf32>
    %cst_14 = arith.constant dense<0.000000e+00> : vector<1xf32>
    %41 = vector.multi_reduction <add>, %40, %cst_14 [1, 2] : vector<1x1x256xf32> to vector<1xf32>
    %42 = vector.shape_cast %41 : vector<1xf32> to vector<1x1x1xf32>
    %43 = vector.extract %42[0, 0, 0] : f32 from vector<1x1x1xf32>
    %44 = vector.broadcast %43 : f32 to vector<1x1x1x1xf32>
    %c0_15 = arith.constant 0 : index
    %c0_16 = arith.constant 0 : index
    %c0_17 = arith.constant 0 : index
    %c0_18 = arith.constant 0 : index
    %45 = vector.load %arg5[%c0_15, %c0_16, %c0_17, %c0_18] : memref<1x1x1x1xf32, #tpu.memory_space<vmem>>, vector<1x1x1x1xf32>
    tpu.vector_store %arg5[%c0_15, %c0_16, %c0_17, %c0_18], %44 {strides = array<i32>} : memref<1x1x1x1xf32, #tpu.memory_space<vmem>>, vector<1x1x1x1xf32>,
    return
  }
  func.func @transform_0(%arg0: i32, %arg1: i32) -> (i32, i32, i32) {
    %c0_i32 = arith.constant 0 : i32
    %c0_i32_0 = arith.constant 0 : i32
    return %arg0, %c0_i32, %arg1 : i32, i32, i32
  }
  func.func @transform_1(%arg0: i32, %arg1: i32) -> (i32, i32, i32) {
    %c0_i32 = arith.constant 0 : i32
    %c0_i32_0 = arith.constant 0 : i32
    return %arg0, %c0_i32, %arg1 : i32, i32, i32
  }
  func.func @transform_2(%arg0: i32, %arg1: i32) -> (i32, i32, i32, i32) {
    %c0_i32 = arith.constant 0 : i32
    %c0_i32_0 = arith.constant 0 : i32
    %c0_i32_1 = arith.constant 0 : i32
    return %arg0, %arg1, %c0_i32, %c0_i32_0 : i32, i32, i32, i32
  }
  func.func @transform_3(%arg0: i32, %arg1: i32) -> (i32, i32, i32, i32) {
    %c0_i32 = arith.constant 0 : i32
    %c0_i32_0 = arith.constant 0 : i32
    %c0_i32_1 = arith.constant 0 : i32
    return %arg0, %arg1, %c0_i32, %c0_i32_0 : i32, i32, i32, i32
  }
}

</mosaic_0001>

<bundles_post_ra>
// kernel: cross_entropy_loss_2d.1
= control target key start
LH: loop header
LB: loop body
LE: loop exit
PB: predicated region body
PF: predicated region fallthrough
CT: control target
= control target key end

     0   :  { %s654_s12 = smov 0   ;;  %s656_s13 = smov 0   ;;  %s715_s0 = inlined_call_operand.vmem [shape: f32[2,4,256], index: 0, kind: input, shape index: {}]   ;;  %s716_s1 = inlined_call_operand.vmem [shape: s32[2,1,256], index: 1, kind: input, shape index: {}]   ;;  %s717_s2 = inlined_call_operand.vmem [shape: f32[2,1,1,1], index: 2, kind: output, shape index: {0}]   ;;  %s718_s3 = inlined_call_operand.vmem [shape: f32[2,1,1,1], index: 3, kind: output, shape index: {1}]  }
   0x1   :  { %s658_s14 = smov 0  }
   0x2 LB: > { %s26_s15 = sadd.s32 1, %s625_s13  ;;  %p561_p0 = scmp.ge.s32.totalorder %s629_s14, 1  ;;  %s629_s14 = sphi %s658_s14, %s14_s14   ;;  %s625_s13 = sphi %s656_s13, %s720_s13   ;;  %s621_s12 = sphi %s654_s12, %s719_s12  }
   0x3   : > { %p28_p1 = scmp.ge.s32.totalorder %s26_s15, 2  ;;  %p179_p2 = scmp.lt.s32.totalorder %s629_s14, 3 }
   0x5   : > { %s722_s15 = smov (%p28_p1, %s26_s15), 0  ;;  %p180_p3 = pnand %p561_p0, %p179_p2 }
   0x6   : > { %p223_p4 = scmp.lt.s32.totalorder (!%p180_p3), %s621_s12, 1  ;;  %vm258_vm0 = vcmask (!%p180_p3), 1043456   ;;  %v297_v13 = vlaneseq (!%p180_p3)  ;;  %v631_v46 = vmov (!%p180_p3), 1966171168   ;;  %v632_v58 = vmov (!%p180_p3), 1  }
   0x7   : > { %183 = sbr.rel (%p180_p3) target bundleno = 302 (0x12e), region = 28  ;;  %v342_v47 = vunpack.c.l.s4 (!%p180_p3), %v631_v46  ;;  %v340_v59 = vcombine.low (!%p180_p3), %v632_v58, %v632_v58  ;;  %vm393_vm6 = vcmask (!%p180_p3), 1040384   ;;  %vm407_vm7 = vcmask (!%p180_p3), 0  }
   0x8   : > { %v298_v17 = vshrl.u32 (!%p180_p3), %v297_v13, 7 }
   0x9   : > { %v343_v54 = vunpack.c.0.s8 (!%p180_p3), %v342_v47 }
   0xa   : > { %v684_v20 = vsub.s32 (!%p180_p3), 0, %v298_v17  ;;  %v686_v23 = vsub.s32 (!%p180_p3), 1, %v298_v17 }
   0xb   : > { %v346_v60 = vsub.s32 (!%p180_p3), %v343_v54, %v298_v17 }
   0xd   : > { %v347_v63 = vrot.slane (!%p180_p3), %v340_v59, %v346_v60 }
   0xe   : > { %s724_s12 = smov (!%p223_p4, %s621_s12), 1 }
   0xf   : > { %s568_s16 = sshll.u32 %s724_s12, 3  ;;  %s564_s20 = sshll.u32 %s724_s12, 1 }
  0x10   : > { %s230_s19 = scalar_lea.vmem %s715_s0, %s568_s16  ;;  %s239_s23 = scalar_lea.vmem %s716_s1, %s564_s20 }
  0x11   : > { %v253_v0 = vld [vmem:[%s230_s19] sm:$0xff]  ;;  %s246_s26 = scalar_lea.vmem %s717_s2, %s724_s12  ;;  %s252_s30 = scalar_lea.vmem %s718_s3, %s724_s12 }
  0x12   : > { %v256_v1 = vcombine.high %v253_v0, %v253_v0  ;;  %v259_v2 = vsel %vm258_vm0, %v253_v0, -inf  ;;  %v254_v21 = vld [vmem:[%s239_s23] sm:$0x3] }
  0x13   : > { %v260_v3 = vrot.slane %v259_v2, 4  ;;  %v302_v24 = vrot.slane %v254_v21, %v684_v20  ;;  %v306_v25 = vrot.slane %v254_v21, %v686_v23  ;;  %vm331_vm3 = vcmp.ne.s32.totalorder %v254_v21, 255 }
  0x14   : > { %v266_v4 = vsel %vm258_vm0, %v256_v1, -inf }
  0x15   : > { %v261_v5 = vmax.f32 %v259_v2, %v260_v3  ;;  %v267_v6 = vrot.slane %v266_v4, 4  ;;  %vm307_vm1 = vcmp.eq.s32.totalorder %v298_v17, %v302_v24  ;;  %vm308_vm2 = vcmp.eq.s32.totalorder %v298_v17, %v306_v25 }
  0x16   : > { %v354_v3 = vrot.slane %v347_v63, %v346_v60 }
  0x17   : > { %v262_v7 = vrot.slane %v261_v5, 2  ;;  %v268_v8 = vmax.f32 %v266_v4, %v267_v6 }
  0x18   : > { %vm355_vm4 = vcmp.ne.s32.totalorder %v354_v3, 0 }
  0x19   : > { %v263_v9 = vmax.f32 %v261_v5, %v262_v7  ;;  %v269_v10 = vrot.slane %v268_v8, 2  ;;  %vm356_vm5 = vmand %vm331_vm3, %vm355_vm4 }
  0x1b   : > { %v264_v11 = vrot.slane %v263_v9, 1  ;;  %v270_v12 = vmax.f32 %v268_v8, %v269_v10 }
  0x1d   : > { %v265_v14 = vmax.f32 %v263_v9, %v264_v11  ;;  %v271_v15 = vrot.slane %v270_v12, 1  ;;  %v633_v11 = vmov 0.0  }
  0x1f   : > { %v272_v16 = vmax.f32 %v270_v12, %v271_v15  ;;  %v565_v12 = vsel %vm356_vm5, 1.0, %v633_v11 }
  0x20   : > { %v419_v15 = vrot.slane %v565_v12, %v686_v23 }
  0x21   : > { %v275_v18 = vcombine.low %v265_v14, %v272_v16  ;;  %v415_v14 = vrot.slane %v565_v12, %v684_v20 }
  0x22   : > { %v423_v24 = vsel %vm393_vm6, %v419_v15, 0.0 }
  0x23   : > { %v277_v19 = vsub.f32 %v253_v0, %v275_v18 }
  0x25   : > { %v278_v22 = vmul.f32 1.442695, %v277_v19  ;;  %v310_v26 = vcombine.high %v277_v19, %v277_v19  ;;  %v312_v27 = vsel %vm307_vm1, %v277_v19, 0.0 }
  0x26   : > { %v314_v30 = vsel %vm258_vm0, %v312_v27, 0.0 }
  0x27   : > { %601 = vpow2.f32 %v278_v22  ;;  %v313_v28 = vsel %vm308_vm2, %v310_v26, 0.0  ;;  %v315_v36 = vrot.slane %v314_v30, 4  ;;  %v422_v22 = vsel %vm393_vm6, %v415_v14, 0.0 }
  0x28   : > { %v321_v34 = vsel %vm258_vm0, %v313_v28, 0.0  ;;  %v424_v26 = vadd.f32 %v423_v24, %v422_v22 }
  0x29   : > { %v322_v39 = vrot.slane %v321_v34, 4  ;;  %v316_v42 = vadd.f32 %v315_v36, %v314_v30 }
  0x2b   : > { %v323_v45 = vadd.f32 %v322_v39, %v321_v34  ;;  %v317_v50 = vrot.slane %v316_v42, 2 }
  0x2d   : > { %v324_v53 = vrot.slane %v323_v45, 2  ;;  %v318_v56 = vadd.f32 %v317_v50, %v316_v42 }
  0x2f   : > { %v325_v57 = vadd.f32 %v324_v53, %v323_v45  ;;  %v319_v61 = vrot.slane %v318_v56, 1 }
  0x31   : > { %v602_v29 = vpop.eup %601  ;;  %v326_v62 = vrot.slane %v325_v57, 1  ;;  %v320_v0 = vadd.f32 %v319_v61, %v318_v56 }
  0x32   : > { %v281_v31 = vcombine.high %v602_v29, %v602_v29  ;;  %v283_v32 = vsel %vm258_vm0, %v602_v29, 0.0 }
  0x33   : > { %v284_v33 = vrot.slane %v283_v32, 4  ;;  %v327_v2 = vadd.f32 %v326_v62, %v325_v57 }
  0x34   : > { %v290_v35 = vsel %vm258_vm0, %v281_v31, 0.0 }
  0x35   : > { %v285_v37 = vadd.f32 %v284_v33, %v283_v32  ;;  %v291_v38 = vrot.slane %v290_v35, 4 }
  0x37   : > { %v286_v40 = vrot.slane %v285_v37, 2  ;;  %v292_v41 = vadd.f32 %v291_v38, %v290_v35 }
  0x39   : > { %v287_v43 = vadd.f32 %v286_v40, %v285_v37  ;;  %v293_v44 = vrot.slane %v292_v41, 2 }
  0x3b   : > { %v288_v48 = vrot.slane %v287_v43, 1  ;;  %v294_v49 = vadd.f32 %v293_v44, %v292_v41 }
  0x3d   : > { %v289_v51 = vadd.f32 %v288_v48, %v287_v43  ;;  %v295_v52 = vrot.slane %v294_v49, 1 }
  0x3f   : > { %v296_v55 = vadd.f32 %v295_v52, %v294_v49  ;;  %603 = vlog2.f32 %v289_v51 }
  0x41   : > { %605 = vlog2.f32 %v296_v55 }
  0x49   : > { %v604_v1 = vpop.eup %603 }
  0x4a   : > { %v358_v4 = vmul.f32 0.6931472, %v604_v1 }
  0x4b   : > { %v606_v5 = vpop.eup %605 }
  0x4c   : > { %v360_v6 = vmul.f32 0.6931472, %v606_v5  ;;  %v361_v7 = vsub.f32 %v358_v4, %v320_v0 }
  0x4e   : > { %v362_v8 = vsub.f32 %v360_v6, %v327_v2 }
  0x50   : > { %v365_v9 = vcombine.low %v361_v7, %v362_v8 }
  0x52   : > { %v372_v10 = vrot.slane %v365_v9, %v346_v60 }
  0x54   : > { %v379_v13 = vrot.slane %v372_v10, %v346_v60 }
  0x56   : > { %v381_v16 = vsel %vm356_vm5, %v379_v13, 0.0 }
  0x57   : > { %v386_v17 = vrot.slane %v381_v16, %v684_v20  ;;  %v390_v18 = vrot.slane %v381_v16, %v686_v23 }
  0x59   : > { %v394_v19 = vsel %vm393_vm6, %v386_v17, 0.0  ;;  %v395_v21 = vsel %vm393_vm6, %v390_v18, 0.0 }
  0x5a   : > { %v396_v25 = vadd.f32 %v395_v21, %v394_v19 }
  0x5c   : > { %397 = vadd.xlane.f32.xlu0 %v396_v25 }
  0x60   : > { %425 = vadd.xlane.f32.xlu0 %v424_v26 }
  0xe9   : > { %v398_v27 = vpop.xlane.xlu0 %397 }
  0xea   : > { %v399_v28 = vrot.slane %v398_v27, 4 }
  0xec   : > { %v400_v29 = vadd.f32 %v399_v28, %v398_v27 }
  0xed   : > { %v426_v30 = vpop.xlane.xlu0 %425 }
  0xee   : > { %v401_v31 = vrot.slane %v400_v29, 2  ;;  %v427_v32 = vrot.slane %v426_v30, 4 }
  0xf0   : > { %v428_v33 = vadd.f32 %v427_v32, %v426_v30  ;;  %v402_v20 = vadd.f32 %v401_v31, %v400_v29 }
  0xf2   : > { %v429_v34 = vrot.slane %v428_v33, 2  ;;  %v403_v23 = vrot.slane %v402_v20, 1 }
  0xf4   : > { %v430_v35 = vadd.f32 %v429_v34, %v428_v33  ;;  %v404_v36 = vadd.f32 %v403_v23, %v402_v20 }
  0xf6   : > { %569 = vpush %v404_v36  ;;  %v431_v37 = vrot.slane %v430_v35, 1 }
  0xf8   : > { %v432_v38 = vadd.f32 %v431_v37, %v430_v35 }
  0xfa   : > { %571 = vpush %v432_v38 }
 0x127   : > { %s570_s27 = spop %569 }
 0x128   : > { %v406_v39 = vstv %s570_s27 }
 0x129   : > { %408 = vst.msk [vmem:[%s246_s26] sm:$0x1] %vm407_vm7, %v406_v39 }
 0x12b   : > { %s572_s4 = spop %571 }
 0x12c   : > { %v434_v40 = vstv %s572_s4 }
 0x12d   : > { %435 = vst.msk [vmem:[%s252_s30] sm:$0x1] %vm407_vm7, %v434_v40 }
 0x12e PF: > { %s14_s14 = sadd.s32 1, %s629_s14   ;;  %s719_s12 = smov %s625_s13 }
 0x12f   : > { %p11_p5 = scmp.ge.s32.totalorder %s14_s14, 4   ;;  %s720_s13 = smov %s722_s15 }
 0x131   :  { %13 = sbr.rel (!%p11_p5) target bundleno = 2 (0x2), region = 73 }

</bundles_post_ra>
